<compile_context>
chip_gen: v7x
topology: tpu7x:2x2x1
jax: 0.10.0
libtpu: 0.0.40
codegen_flags: <defaults>
</compile_context>

<pallas_src>
import functools

import jax
import jax.numpy as jnp
from jax.experimental import pallas as pl
from jax.experimental.pallas import tpu as pltpu


def _upsample_matmul_kernel(w_ref, x_ref, b_ref, o_ref):
    # w_ref: (P, Cin)   x_ref: (Cin, TM)   b_ref: (P, 1)   o_ref: (P, TM)
    acc = jnp.dot(w_ref[...], x_ref[...], preferred_element_type=jnp.float32)
    o_ref[...] = (acc + b_ref[...]).astype(o_ref.dtype)


def _choose_tm(M, Cin, P, itemsize, n_batch=1, vmem_budget_bytes=24 << 20):
    """Pick the pixel-tile width (lane axis), biggest that fits the VMEM budget.

    Per-step VMEM ~ 2*tm*Cin*itemsize (double-buffered x tile) +
    2*tm*P*4 (double-buffered out tile) plus the resident (P,Cin) weight and
    (P,1) bias.  Budget kept well under the 32 MiB scoped default (and v7x's
    64 MiB physical VMEM per TC).
    """
    tm = 128
    for cand in (2048, 1024, 512, 256, 128):
        per_step = 2 * cand * Cin * itemsize + 2 * cand * P * 4 + P * (Cin + 1) * 4
        if per_step <= vmem_budget_bytes:
            tm = cand
            break
    Mp = pl.cdiv(M, 128) * 128
    tm = min(tm, Mp)
    # Give the parallel grid at least 2 steps when possible (v7x: 2 TCs).
    if n_batch * (Mp // max(tm, 1)) < 2 and Mp >= 256:
        tm = max(128, (Mp // 2) // 128 * 128)
    return tm


def _pallas_taps_matmul(w_t, x_b, b_col, out_dtype):
    """w_t: (P, Cin), x_b: (N, Cin, M), b_col: (P, 1) -> (N, P, M) in out_dtype."""
    P, Cin = w_t.shape
    N, _, M = x_b.shape
    itemsize = jnp.dtype(x_b.dtype).itemsize
    tm = _choose_tm(M, Cin, P, itemsize, n_batch=N)

    Mp = pl.cdiv(M, tm) * tm
    if Mp != M:
        x_b = jnp.pad(x_b, ((0, 0), (0, 0), (0, Mp - M)))

    out = pl.pallas_call(
        _upsample_matmul_kernel,
        out_shape=jax.ShapeDtypeStruct((N, P, Mp), out_dtype),
        grid_spec=pltpu.PrefetchScalarGridSpec(
            num_scalar_prefetch=0,
            grid=(N, Mp // tm),
            in_specs=[
                pl.BlockSpec((P, Cin), lambda n, i: (0, 0)),          # resident weights
                pl.BlockSpec((None, Cin, tm), lambda n, i: (n, 0, i)),  # lane-dense x tile
                pl.BlockSpec((P, 1), lambda n, i: (0, 0)),            # resident bias col
            ],
            out_specs=pl.BlockSpec((None, P, tm), lambda n, i: (n, 0, i)),  # lane-dense out
        ),
        compiler_params=pltpu.CompilerParams(
            dimension_semantics=("parallel", "parallel"),
            vmem_limit_bytes=32 * 1024 * 1024,
        ),
    )(w_t, x_b, b_col)
    return out[:, :, :M]


@functools.partial(jax.jit, static_argnames=("stride", "mxu_dtype"))
def conv_transpose2d(x_nchw, weight, bias, w_t=None, b_col=None, *,
                     stride, mxu_dtype=None):
    """Matches torch.nn.ConvTranspose2d(in, out, kernel_size=K, stride=stride).

    x_nchw : (N, Cin, H, W)
    weight : (Cin, Cout, KH, KW)   (PyTorch ConvTranspose2d layout)
    bias   : (Cout,)
    """
    N, Cin, H, W = x_nchw.shape
    _, Cout, KH, KW = weight.shape
    sh = sw = stride
    P = KH * KW * Cout
    fast = (sh == KH) and (sw == KW)   # non-overlapping taps -> pure interleave

    # Weight (Cin, Cout, KH, KW) -> (KH*KW*Cout, Cin); contraction dim last.
    if w_t is None:
        w_t = jnp.transpose(weight, (2, 3, 1, 0)).reshape(P, Cin)
    if fast:
        if b_col is None:
            b_col = jnp.tile(bias[None, :], (KH * KW, 1)).reshape(P, 1)
        b_col = b_col.astype(jnp.float32)
        out_dtype = x_nchw.dtype          # minimal writeback / transpose bytes
    else:
        # Overlapping taps: bias must be added once per output pixel, not per
        # tap, so keep it out of the matmul and add it after the scatter.
        b_col = jnp.zeros((P, 1), jnp.float32)
        out_dtype = jnp.float32           # f32 accumulation in the scatter-add

    # NCHW -> (N, Cin, H*W): a pure view, no HBM transpose pass.  Cin rides the
    # sublanes, flattened per-image pixels ride the lanes inside the kernel.
    x_b = x_nchw.reshape(N, Cin, H * W)

    if mxu_dtype is not None:
        x_b = x_b.astype(mxu_dtype)
        w_t = w_t.astype(mxu_dtype)

    y = _pallas_taps_matmul(w_t, x_b, b_col, out_dtype)   # (N, P, H*W)
    y = y.reshape(N, KH, KW, Cout, H, W)

    out_h = (H - 1) * sh + KH
    out_w = (W - 1) * sw + KW

    if fast:
        # stride == kernel: layout-only interleave, lands directly in NCHW.
        out = jnp.transpose(y, (0, 3, 4, 1, 5, 2))    # (N, Cout, H, KH, W, KW)
        out = out.reshape(N, Cout, out_h, out_w)
    else:
        # General case: strided scatter-add of each tap, f32 accumulation.
        out = jnp.zeros((N, Cout, out_h, out_w), dtype=jnp.float32)
        for kh in range(KH):
            for kw in range(KW):
                out = out.at[:, :, kh:kh + (H - 1) * sh + 1:sh,
                                   kw:kw + (W - 1) * sw + 1:sw].add(y[:, kh, kw])
        out = out + bias[None, :, None, None]

    return out.astype(x_nchw.dtype)


class UpsamplePallas:
    """Deterministic-weight stand-in for the PyTorch Upsample module."""

    def __init__(self, input_dim, output_dim, kernel, stride, key):
        self.stride = stride
        self.kernel = kernel
        kw_key, b_key = jax.random.split(key)
        # Match PyTorch default init scale: U(-1/sqrt(fan), 1/sqrt(fan)).
        fan = input_dim * kernel * kernel
        lim = 1.0 / jnp.sqrt(jnp.array(fan, jnp.float32))
        self.weight = jax.random.uniform(
            kw_key, (input_dim, output_dim, kernel, kernel),
            minval=-lim, maxval=lim, dtype=jnp.float32)
        self.bias = jax.random.uniform(
            b_key, (output_dim,), minval=-lim, maxval=lim, dtype=jnp.float32)
        # Hoisted re-layouts (avoid per-call transpose/tile/cast of the weights).
        P = kernel * kernel * output_dim
        self._w_t = jnp.transpose(self.weight, (2, 3, 1, 0)).reshape(P, input_dim)
        self._w_t_bf16 = self._w_t.astype(jnp.bfloat16)
        self._b_col = jnp.tile(self.bias[None, :], (kernel * kernel, 1)).reshape(P, 1)

    def __call__(self, x, mxu_dtype=None):
        # TODO(synk): accept/produce NHWC at the model boundary to drop the
        # remaining output layout transpose; kept NCHW to match the PyTorch spec.
        w_t = self._w_t_bf16 if mxu_dtype == jnp.bfloat16 else self._w_t
        return conv_transpose2d(
            x, self.weight, self.bias, w_t, self._b_col,
            stride=self.stride, mxu_dtype=mxu_dtype)


def _reference_conv_transpose2d(x, weight, bias, stride):
    """Pure-JAX reference exactly matching torch.nn.ConvTranspose2d (pad=0)."""
    Cin, Cout, KH, KW = weight.shape
    # Equivalent regular cross-correlation: swap channel axes + flip spatial.
    w_conv = jnp.transpose(weight, (1, 0, 2, 3))[:, :, ::-1, ::-1]  # (Cout,Cin,KH,KW)
    out = jax.lax.conv_general_dilated(
        x, w_conv,
        window_strides=(1, 1),
        padding=[(KH - 1, KH - 1), (KW - 1, KW - 1)],
        lhs_dilation=(stride, stride),
        dimension_numbers=("NCHW", "OIHW", "NCHW"))
    return out + bias[None, :, None, None]


if __name__ == "__main__":
    key = jax.random.PRNGKey(0)
    k_x, k_mod = jax.random.split(key)

    # Shapes consistent with the module: batch=2, in_ch=4, 16x16 spatial,
    # ConvTranspose2d(4 -> 8, kernel=2, stride=2)  => output (2, 8, 32, 32).
    N, Cin, H, W = 2, 4, 16, 16
    Cout, K, S = 8, 2, 2

    x = jax.random.normal(k_x, (N, Cin, H, W), dtype=jnp.float32)
    mod = UpsamplePallas(Cin, Cout, K, S, k_mod)

    out = jax.block_until_ready(mod(x))
    ref = jax.block_until_ready(
        _reference_conv_transpose2d(x, mod.weight, mod.bias, S))

    assert out.shape == (N, Cout, (H - 1) * S + K, (W - 1) * S + K)
    assert out.dtype == x.dtype
    err = float(jnp.max(jnp.abs(out - ref)))
    assert jnp.allclose(out, ref, atol=1e-4, rtol=1e-4), err

    # bf16 MXU feed (v5e/v6e/v7x-friendly): same kernel, f32 accumulate + bias.
    out_bf16 = jax.block_until_ready(mod(x, mxu_dtype=jnp.bfloat16))
    assert out_bf16.shape == out.shape
    assert jnp.allclose(out_bf16, ref, atol=5e-2, rtol=5e-2)

    print("KERNEL_OK")
</pallas_src>

<mosaic_0001>
module attributes {stable_mosaic.version = 11 : i64} {
  func.func @_upsample_matmul_kernel(%arg0: i32, %arg1: i32, %arg2: memref<32x4xf32, #tpu.memory_space<vmem>>, %arg3: memref<1x4x256xf32, #tpu.memory_space<vmem>>, %arg4: memref<32x1xf32, #tpu.memory_space<vmem>>, %arg5: memref<1x32x256xf32, #tpu.memory_space<vmem>>) attributes {dimension_semantics = [#tpu.dimension_semantics<parallel>, #tpu.dimension_semantics<parallel>], iteration_bounds = array<i64: 2, 1>, scalar_prefetch = 0 : i64, scratch_operands = 0 : i64, tpu.core_type = #tpu.core_type<tc>, window_params = [{pipeline_mode = #tpu.pipeline_mode<synchronous>, transform_indices = @transform_0, window_bounds = array<i64: 32, 4>}, {transform_indices = @transform_1, window_bounds = array<i64: 1, 4, 256>}, {pipeline_mode = #tpu.pipeline_mode<synchronous>, transform_indices = @transform_2, window_bounds = array<i64: 32, 1>}, {transform_indices = @transform_3, window_bounds = array<i64: 1, 32, 256>}]} {
    %c0 = arith.constant 0 : index
    %c0_0 = arith.constant 0 : index
    %0 = vector.load %arg2[%c0, %c0_0] : memref<32x4xf32, #tpu.memory_space<vmem>>, vector<32x4xf32>
    %c0_1 = arith.constant 0 : index
    %c0_2 = arith.constant 0 : index
    %c0_3 = arith.constant 0 : index
    %1 = vector.load %arg3[%c0_1, %c0_2, %c0_3] : memref<1x4x256xf32, #tpu.memory_space<vmem>>, vector<1x4x256xf32>
    %2 = vector.shape_cast %1 : vector<1x4x256xf32> to vector<4x256xf32>
    %cst = arith.constant dense<0.000000e+00> : vector<32x256xf32>
    %3 = tpu.matmul %0, %2, %cst {dimension_numbers = #tpu.dot_dimension_numbers<[1], [0], [0], [1], [0, 0, 1, 1], [], []>} : vector<32x4xf32>, vector<4x256xf32>, vector<32x256xf32> -> vector<32x256xf32>
    %c0_4 = arith.constant 0 : index
    %c0_5 = arith.constant 0 : index
    %4 = vector.load %arg4[%c0_4, %c0_5] : memref<32x1xf32, #tpu.memory_space<vmem>>, vector<32x1xf32>
    %5 = vector.broadcast %4 : vector<32x1xf32> to vector<32x256xf32>
    %6 = arith.addf %3, %5 : vector<32x256xf32>
    %c0_6 = arith.constant 0 : index
    %c0_7 = arith.constant 0 : index
    %c0_8 = arith.constant 0 : index
    %7 = vector.load %arg5[%c0_6, %c0_7, %c0_8] : memref<1x32x256xf32, #tpu.memory_space<vmem>>, vector<1x32x256xf32>
    %8 = vector.shape_cast %7 : vector<1x32x256xf32> to vector<32x256xf32>
    %9 = vector.shape_cast %6 : vector<32x256xf32> to vector<1x32x256xf32>
    tpu.vector_store %arg5[%c0_6, %c0_7, %c0_8], %9 {strides = array<i32>} : memref<1x32x256xf32, #tpu.memory_space<vmem>>, vector<1x32x256xf32>,
    return
  }
  func.func @transform_0(%arg0: i32, %arg1: i32) -> (i32, i32) {
    %c0_i32 = arith.constant 0 : i32
    %c0_i32_0 = arith.constant 0 : i32
    %c0_i32_1 = arith.constant 0 : i32
    return %c0_i32, %c0_i32_0 : i32, i32
  }
  func.func @transform_1(%arg0: i32, %arg1: i32) -> (i32, i32, i32) {
    %c0_i32 = arith.constant 0 : i32
    %c0_i32_0 = arith.constant 0 : i32
    return %arg0, %c0_i32, %arg1 : i32, i32, i32
  }
  func.func @transform_2(%arg0: i32, %arg1: i32) -> (i32, i32) {
    %c0_i32 = arith.constant 0 : i32
    %c0_i32_0 = arith.constant 0 : i32
    %c0_i32_1 = arith.constant 0 : i32
    return %c0_i32, %c0_i32_0 : i32, i32
  }
  func.func @transform_3(%arg0: i32, %arg1: i32) -> (i32, i32, i32) {
    %c0_i32 = arith.constant 0 : i32
    %c0_i32_0 = arith.constant 0 : i32
    return %arg0, %c0_i32, %arg1 : i32, i32, i32
  }
}

</mosaic_0001>

<bundles_post_ra>
// kernel: conv_transpose2d.1
= control target key start
LH: loop header
LB: loop body
LE: loop exit
PB: predicated region body
PF: predicated region fallthrough
CT: control target
= control target key end

     0   :  { %s539_s12 = smov 0   ;;  %s541_s13 = smov 0   ;;  %s600_s0 = inlined_call_operand.vmem [shape: f32[32,4], index: 0, kind: input, shape index: {}]   ;;  %s601_s1 = inlined_call_operand.vmem [shape: f32[2,4,256], index: 1, kind: input, shape index: {}]   ;;  %s602_s2 = inlined_call_operand.vmem [shape: f32[32,1], index: 2, kind: input, shape index: {}]   ;;  %s603_s3 = inlined_call_operand.vmem [shape: f32[2,32,256], index: 3, kind: output, shape index: {}]  }
   0x1   :  { %s543_s14 = smov 0  }
   0x2 LB: > { %s25_s15 = sadd.s32 1, %s511_s13  ;;  %p447_p0 = scmp.ge.s32.totalorder %s515_s14, 1  ;;  %s515_s14 = sphi %s543_s14, %s13_s14   ;;  %s511_s13 = sphi %s541_s13, %s605_s13   ;;  %s507_s12 = sphi %s539_s12, %s604_s12  }
   0x3   : > { %p27_p1 = scmp.ge.s32.totalorder %s25_s15, 2  ;;  %p158_p2 = scmp.lt.s32.totalorder %s515_s14, 3 }
   0x5   : > { %s607_s15 = smov (%p27_p1, %s25_s15), 0  ;;  %p159_p3 = pnand %p447_p0, %p158_p2 }
   0x6   : > { %p191_p4 = scmp.lt.s32.totalorder (!%p159_p3), %s507_s12, 1  ;;  %v517_v0 = vmov (!%p159_p3), 0.0   ;;  %v217_v1 = vld [vmem:[%s602_s2 + $0x10] sm:$0xff] (!%p159_p3)  ;;  %v518_v2 = vmov (!%p159_p3), 0   ;;  %v215_v3 = vld [vmem:[%s602_s2] sm:$0xff] (!%p159_p3)  ;;  %v218_v4 = vld [vmem:[%s602_s2 + $0x18] sm:$0xff] (!%p159_p3) }
   0x7   : > { %162 = sbr.rel (%p159_p3) target bundleno = 242 (0xf2), region = 32  ;;  %323 = vmatprep.mubr.f32.mxu0 (!%p159_p3), %v517_v0  ;;  %335 = vmatprep.mubr.f32.mxu1 (!%p159_p3), %v517_v0  ;;  %v216_v5 = vld [vmem:[%s602_s2 + $0x8] sm:$0xff] (!%p159_p3)  ;;  %vm254_vm0 = vcmask (!%p159_p3), 1043456   ;;  %v210_v8 = vld [vmem:[%s600_s0] sm:$0xff] (!%p159_p3)  ;;  %vm241_vm1 = vcmask (!%p159_p3), 31744   ;;  %v212_v9 = vld [vmem:[%s600_s0 + $0x10] sm:$0xff] (!%p159_p3) }
   0x8   : > { %491 = vset.pattern.permute.xlu1 (!%p159_p3), %v518_v2  ;;  %490 = vset.pattern.permute.xlu0 (!%p159_p3), %v518_v2  ;;  %v211_v10 = vld [vmem:[%s600_s0 + $0x8] sm:$0xff] (!%p159_p3)  ;;  %v213_v11 = vld [vmem:[%s600_s0 + $0x18] sm:$0xff] (!%p159_p3) }
   0x9   : > { %231 = vperm.xlu1 (!%p159_p3), %491, %v217_v1   ;;  %221 = vperm.xlu0 (!%p159_p3), %490, %v215_v3  }
   0xd   : > { %236 = vperm.xlu1 (!%p159_p3), %491, %v218_v4   ;;  %226 = vperm.xlu0 (!%p159_p3), %490, %v216_v5  }
   0xe   : > { %s609_s12 = smov (!%p191_p4, %s507_s12), 1 }
   0xf   : > { %s460_s20 = sshll.u32 %s609_s12, 3  ;;  %s461_s9 = sshll.u32 %s609_s12, 6 }
  0x10   : > { %s198_s27 = scalar_lea.vmem %s601_s1, %s460_s20  ;;  %s208_s16 = scalar_lea.vmem %s603_s3, %s461_s9 }
  0x11   : > { %v214_v6 = vld [vmem:[%s198_s27] sm:$0xff] }
  0x12   : > { %v240_v7 = vcombine.high %v214_v6, %v214_v6 }
  0x14   : > { %452 = vmatprep.subr.msk.mxu0 %vm254_vm0, %v240_v7  ;;  %462 = vmatprep.subr.msk.mxu1 %vm254_vm0, %v240_v7 }
  0x15   : > { %453 = vmatpush1.msk.msra.mxu0 %vm254_vm0, %v214_v6  ;;  %463 = vmatpush1.msk.msra.mxu1 %vm254_vm0, %v214_v6 }
  0x16   : > { %454 = vmatmul.mubr.msk.f32.vlgmr.msra.gmra.mrb[0].mxu0 %vm241_vm1, %v210_v8  ;;  %456 = vmatmul.mubr.msk.f32.vlgmr.msra.gmra.mrb[0].mxu1 %vm241_vm1, %v212_v9 }
  0x17   : > { %329 = vmatprep.mubr.f32.mxu0 %v517_v0  ;;  %341 = vmatprep.mubr.f32.mxu1 %v517_v0 }
  0x1a   : > { %455 = vmatmul.mubr.msk.f32.gmra.mrb[2].mxu0 %vm241_vm1, %v211_v10  ;;  %457 = vmatmul.mubr.msk.f32.gmra.mrb[2].mxu1 %vm241_vm1, %v213_v11 }
  0x88   : > { %v232_v12 = vpop.permute.xlu1 %231  ;;  %v222_v13 = vpop.permute.xlu0 %221 }
  0x8c   : > { %v237_v22 = vpop.permute.xlu1 %236  ;;  %v227_v23 = vpop.permute.xlu0 %226 }
  0xe9   : > { %v325_v14 = vpop.f32.mrb[0].mxu0  ;;  %v337_v15 = vpop.f32.mrb[0].mxu1 }
  0xea   : > { %v326_v16 = vadd.f32 %v325_v14, %v222_v13  ;;  %v338_v17 = vadd.f32 %v337_v15, %v232_v12  ;;  %v327_v18 = vpop.f32.mrb[1].mxu0  ;;  %v339_v19 = vpop.f32.mrb[1].mxu1 }
  0xeb   : > { %v328_v20 = vadd.f32 %v327_v18, %v222_v13  ;;  %v340_v21 = vadd.f32 %v339_v19, %v232_v12 }
  0xec   : > { %348 = vst [vmem:[%s208_s16] sm:$0xff] %v326_v16  ;;  %352 = vst [vmem:[%s208_s16 + $0x20] sm:$0xff] %v338_v17 }
  0xed   : > { %349 = vst [vmem:[%s208_s16 + $0x8] sm:$0xff] %v328_v20  ;;  %353 = vst [vmem:[%s208_s16 + $0x28] sm:$0xff] %v340_v21  ;;  %v331_v24 = vpop.f32.mrb[2].mxu0  ;;  %v343_v25 = vpop.f32.mrb[2].mxu1 }
  0xee   : > { %v332_v26 = vadd.f32 %v331_v24, %v227_v23  ;;  %v344_v27 = vadd.f32 %v343_v25, %v237_v22  ;;  %v333_v28 = vpop.f32.mrb[3].mxu0  ;;  %v345_v29 = vpop.f32.mrb[3].mxu1 }
  0xef   : > { %v334_v30 = vadd.f32 %v333_v28, %v227_v23  ;;  %v346_v31 = vadd.f32 %v345_v29, %v237_v22 }
  0xf0   : > { %350 = vst [vmem:[%s208_s16 + $0x10] sm:$0xff] %v332_v26  ;;  %354 = vst [vmem:[%s208_s16 + $0x30] sm:$0xff] %v344_v27 }
  0xf1   : > { %351 = vst [vmem:[%s208_s16 + $0x18] sm:$0xff] %v334_v30  ;;  %355 = vst [vmem:[%s208_s16 + $0x38] sm:$0xff] %v346_v31 }
  0xf2 PF: > { %s13_s14 = sadd.s32 1, %s515_s14   ;;  %s604_s12 = smov %s511_s13 }
  0xf3   : > { %p10_p5 = scmp.ge.s32.totalorder %s13_s14, 4   ;;  %s605_s13 = smov %s607_s15 }
  0xf5   :  { %12 = sbr.rel (!%p10_p5) target bundleno = 2 (0x2), region = 62 }

</bundles_post_ra>
